<compile_context>
chip_gen: v5e
topology: v5e:2x2
jax: 0.10.0
libtpu: 0.0.40
codegen_flags: <defaults>
</compile_context>

<pallas_src>
import numpy as np
import jax
import jax.numpy as jnp
from jax.experimental import pallas as pl
from jax.experimental.pallas import tpu as pltpu

# Hard-coded sizes from STNet.__init__
KW1, STRIDE_W = 30, 2     # conv1 kernel (1, 30), stride (1, 2)
KH2 = 89                  # conv2 kernel (89, 1)  -> input height must be 89
EPS = 1e-5                # BatchNorm eps


# ----------------------------- Pallas kernel -------------------------------

def stnet_fused_kernel(x_ref, w1_ref, c1_ref, w2_ref, c2_ref,
                       w3_ref, c3_ref, o_ref):
    """Fused conv1+BN+ReLU -> conv2+BN+ReLU -> conv3(1x1)+BN+ReLU, one segment.

    Shapes (static, derived from the refs; BN scale is pre-folded into weights):
      x_ref  : (1, N, W, H)     input slab for this segment (W sublanes, H lanes)
      w1_ref : (C1*Wout, W)     expanded + BN-scaled conv1 weight, rows (c1, w)
      c1_ref : (C1*Wout, 1)     folded BN1 offset (incl. conv1 bias), per row
      w2_ref : (C1, H, C2)      BN-scaled conv2 weight, per input channel
      c2_ref : (1, C2)          folded BN2 offset (incl. conv2 bias)
      w3_ref : (C2, C3)         BN-scaled conv3 1x1 weight
      c3_ref : (1, C3)          folded BN3 offset (incl. conv3 bias)
      o_ref  : (1, N*Wout, C3)  output rows ordered (n, w)
    """
    N = x_ref.shape[1]
    C1, H, C2 = w2_ref.shape
    Wout = w1_ref.shape[0] // C1

    w1 = w1_ref[...]
    c1 = c1_ref[...]

    # ---- conv1 (BN scale folded) + offset + ReLU: one MXU matmul per batch --
    # y[n][c1*Wout + w, h] = relu( sum_k (a1*W1)[c1,k] * x[n, 2w+k, h] + c1 )
    ys = []
    for n in range(N):
        y = jnp.dot(w1, x_ref[0, n], preferred_element_type=jnp.float32)  # (C1*Wout, H)
        ys.append(jnp.maximum(y + c1, 0.0))

    # ---- conv2 (89x1, BN scale folded): one MXU dot per input channel -------
    # z[(n*Wout + w), c2] = relu( sum_{c1,h} y[n][c1*Wout + w, h] * (a2*W2)[c2,c1,h] + c2 )
    acc = jnp.zeros((N * Wout, C2), jnp.float32)
    for ci in range(C1):
        lhs = jnp.concatenate(
            [ys[n][ci * Wout:(ci + 1) * Wout, :] for n in range(N)], axis=0)  # (N*Wout, H)
        acc = acc + jnp.dot(lhs, w2_ref[ci], preferred_element_type=jnp.float32)
    z = jnp.maximum(acc + c2_ref[...], 0.0)                                    # (N*Wout, C2)

    # ---- conv3 (1x1, BN scale folded) + offset + ReLU ------------------------
    u = jnp.dot(z, w3_ref[...], preferred_element_type=jnp.float32)            # (N*Wout, C3)
    u = jnp.maximum(u + c3_ref[...], 0.0)
    o_ref[0] = u


# ------------------------------- wrapper ------------------------------------

def stnet_forward(x, p):
    """x: (S, N, 1, H, W) float32.  Returns (N, C3, 1, S*Wout) like the torch module."""
    S, N, _, H, W = x.shape
    assert H == KH2, "conv2 kernel (89,1) spans the full input height; H must be 89"
    assert W >= KW1, "input width must be at least the conv1 kernel width (30)"
    C1 = p["W1"].shape[0]
    C2 = p["W2"].shape[0]
    C3 = p["W3"].shape[0]
    Wout = (W - KW1) // STRIDE_W + 1

    # glue: fold BatchNorm (eval mode, running stats) + conv bias into scale/offset
    a1 = p["g1"] / jnp.sqrt(p["v1"] + EPS)
    c1 = p["bt1"] + a1 * (p["b1"] - p["m1"])
    a2 = p["g2"] / jnp.sqrt(p["v2"] + EPS)
    c2 = p["bt2"] + a2 * (p["b2"] - p["m2"])
    a3 = p["g3"] / jnp.sqrt(p["v3"] + EPS)
    c3 = p["bt3"] + a3 * (p["b3"] - p["m3"])

    # conv1 as ONE matmul: expanded weight (C1*Wout, W), rows ordered (c1, w),
    # with the 30 taps of each output column placed at stride-2 column offsets.
    # Built via a constant numpy selection tensor -> single einsum in the trace.
    sel = np.zeros((KW1, Wout, W), np.float32)
    for w in range(Wout):
        for k in range(KW1):
            sel[k, w, STRIDE_W * w + k] = 1.0
    w1 = p["W1"][:, 0, 0, :]                                        # (C1, KW1)
    w_exp = jnp.tensordot(w1, jnp.asarray(sel), axes=([1], [0]))    # (C1, Wout, W)
    w_exp = (w_exp * a1[:, None, None]).reshape(C1 * Wout, W)       # fold BN1 scale
    c1e = jnp.repeat(c1, Wout).reshape(C1 * Wout, 1)                # row (c1*Wout+w) -> c1[c1]

    # conv2 weight (C2, C1, 89, 1) -> (C1, H, C2), BN2 scale folded on output ch.
    w2_k = jnp.transpose(p["W2"][:, :, :, 0], (1, 2, 0)) * a2[None, None, :]
    # conv3 weight (C3, C2, 1, 1) -> (C2, C3), BN3 scale folded on output ch.
    w3_t = p["W3"][:, :, 0, 0].T * a3[None, :]

    # (S, N, 1, H, W) -> (S, N, W, H): sliding axis in sublanes, height in lanes.
    x_t = jnp.transpose(x[:, :, 0, :, :], (0, 1, 3, 2))

    # Single fused kernel: grid over segments only; weights/offsets use constant
    # index_maps so they are DMA'd once and stay resident across grid steps.
    out2 = pl.pallas_call(
        stnet_fused_kernel,
        out_shape=jax.ShapeDtypeStruct((S, N * Wout, C3), jnp.float32),
        grid=(S,),
        in_specs=[
            pl.BlockSpec((1, N, W, H), lambda s: (s, 0, 0, 0)),
            pl.BlockSpec((C1 * Wout, W), lambda s: (0, 0)),
            pl.BlockSpec((C1 * Wout, 1), lambda s: (0, 0)),
            pl.BlockSpec((C1, H, C2), lambda s: (0, 0, 0)),
            pl.BlockSpec((1, C2), lambda s: (0, 0)),
            pl.BlockSpec((C2, C3), lambda s: (0, 0)),
            pl.BlockSpec((1, C3), lambda s: (0, 0)),
        ],
        out_specs=pl.BlockSpec((1, N * Wout, C3), lambda s: (s, 0, 0)),
        compiler_params=pltpu.CompilerParams(
            dimension_semantics=("parallel",)),
    )(x_t, w_exp, c1e,
      w2_k, c2.reshape(1, C2),
      w3_t, c3.reshape(1, C3))

    # glue: back to the torch NCHW output of the width-concatenated conv3.
    out = out2.reshape(S, N, Wout, C3)
    out = jnp.transpose(out, (1, 3, 0, 2)).reshape(N, C3, 1, S * Wout)
    # TODO(synk): torch forward calls print(conv3.size()); host-side debug print omitted.
    return out


# --------------------------- params / reference -----------------------------

def init_params(key, feature_depth):
    C1, C2, C3 = feature_depth
    ks = iter(jax.random.split(key, 24))

    def normal(shape, s=0.1):
        return s * jax.random.normal(next(ks), shape, jnp.float32)

    def gamma(c):
        return 1.0 + 0.1 * jax.random.normal(next(ks), (c,), jnp.float32)

    def var(c):
        return jax.random.uniform(next(ks), (c,), jnp.float32, minval=0.5, maxval=1.5)

    return dict(
        W1=normal((C1, 1, 1, KW1)), b1=normal((C1,)),
        g1=gamma(C1), bt1=normal((C1,)), m1=normal((C1,)), v1=var(C1),
        W2=normal((C2, C1, KH2, 1)), b2=normal((C2,)),
        g2=gamma(C2), bt2=normal((C2,)), m2=normal((C2,)), v2=var(C2),
        W3=normal((C3, C2, 1, 1)), b3=normal((C3,)),
        g3=gamma(C3), bt3=normal((C3,)), m3=normal((C3,)), v3=var(C3),
    )


def _bn_eval(x, g, b, m, v):
    inv = g / jnp.sqrt(v + EPS)
    return x * inv[None, :, None, None] + (b - m * inv)[None, :, None, None]


def ref_forward(x, p):
    """Plain-JAX reference using lax.conv (NCHW, OIHW), eval-mode BN, identity dropout."""
    dn = ("NCHW", "OIHW", "NCHW")
    hp = jax.lax.Precision.HIGHEST
    S = x.shape[0]
    outs = []
    for s in range(S):
        xi = x[s]
        y = jax.lax.conv_general_dilated(xi, p["W1"], (1, STRIDE_W), "VALID",
                                         dimension_numbers=dn, precision=hp)
        y = y + p["b1"][None, :, None, None]
        y = jnp.maximum(_bn_eval(y, p["g1"], p["bt1"], p["m1"], p["v1"]), 0.0)
        z = jax.lax.conv_general_dilated(y, p["W2"], (1, 1), "VALID",
                                         dimension_numbers=dn, precision=hp)
        z = z + p["b2"][None, :, None, None]
        z = jnp.maximum(_bn_eval(z, p["g2"], p["bt2"], p["m2"], p["v2"]), 0.0)
        outs.append(z)
    cat = jnp.concatenate(outs, axis=3)
    u = jax.lax.conv_general_dilated(cat, p["W3"], (1, 1), "VALID",
                                     dimension_numbers=dn, precision=hp)
    u = u + p["b3"][None, :, None, None]
    u = jnp.maximum(_bn_eval(u, p["g3"], p["bt3"], p["m3"], p["v3"]), 0.0)
    return u


if __name__ == "__main__":
    # image_size[0] = S segments; height must be 89 (conv2 kernel), width small.
    S, N, H, W = 2, 2, KH2, 32
    feature_depth = (16, 8, 4)   # conv1->16 (conv2 expects 16), conv2->8 (conv3 expects 8), conv3->4

    key = jax.random.PRNGKey(0)
    kx, kp = jax.random.split(key)
    x = jax.random.normal(kx, (S, N, 1, H, W), jnp.float32)
    params = init_params(kp, feature_depth)

    out = jax.jit(stnet_forward)(x, params)
    out = jax.block_until_ready(out)

    Wout = (W - KW1) // STRIDE_W + 1
    assert out.shape == (N, feature_depth[2], 1, S * Wout), out.shape

    ref = ref_forward(x, params)
    err = float(jnp.max(jnp.abs(out - ref)))
    assert err < 5e-2, f"max abs err {err}"

    print("KERNEL_OK")
</pallas_src>

<mosaic_0001>
module attributes {stable_mosaic.version = 11 : i64} {
  func.func @stnet_fused_kernel(%arg0: i32, %arg1: memref<1x2x32x89xf32, #tpu.memory_space<vmem>>, %arg2: memref<32x32xf32, #tpu.memory_space<vmem>>, %arg3: memref<32x1xf32, #tpu.memory_space<vmem>>, %arg4: memref<16x89x8xf32, #tpu.memory_space<vmem>>, %arg5: memref<1x8xf32, #tpu.memory_space<vmem>>, %arg6: memref<8x4xf32, #tpu.memory_space<vmem>>, %arg7: memref<1x4xf32, #tpu.memory_space<vmem>>, %arg8: memref<1x4x4xf32, #tpu.memory_space<vmem>>) attributes {dimension_semantics = [#tpu.dimension_semantics<parallel>], iteration_bounds = array<i64: 2>, scalar_prefetch = 0 : i64, scratch_operands = 0 : i64, tpu.core_type = #tpu.core_type<tc>, window_params = [{transform_indices = @transform_0, window_bounds = array<i64: 1, 2, 32, 89>}, {pipeline_mode = #tpu.pipeline_mode<synchronous>, transform_indices = @transform_1, window_bounds = array<i64: 32, 32>}, {pipeline_mode = #tpu.pipeline_mode<synchronous>, transform_indices = @transform_2, window_bounds = array<i64: 32, 1>}, {pipeline_mode = #tpu.pipeline_mode<synchronous>, transform_indices = @transform_3, window_bounds = array<i64: 16, 89, 8>}, {pipeline_mode = #tpu.pipeline_mode<synchronous>, transform_indices = @transform_4, window_bounds = array<i64: 1, 8>}, {pipeline_mode = #tpu.pipeline_mode<synchronous>, transform_indices = @transform_5, window_bounds = array<i64: 8, 4>}, {pipeline_mode = #tpu.pipeline_mode<synchronous>, transform_indices = @transform_6, window_bounds = array<i64: 1, 4>}, {transform_indices = @transform_7, window_bounds = array<i64: 1, 4, 4>}]} {
    %c0 = arith.constant 0 : index
    %c0_0 = arith.constant 0 : index
    %0 = vector.load %arg2[%c0, %c0_0] : memref<32x32xf32, #tpu.memory_space<vmem>>, vector<32x32xf32>
    %c0_1 = arith.constant 0 : index
    %c0_2 = arith.constant 0 : index
    %1 = vector.load %arg3[%c0_1, %c0_2] : memref<32x1xf32, #tpu.memory_space<vmem>>, vector<32x1xf32>
    %c0_3 = arith.constant 0 : index
    %c0_4 = arith.constant 0 : index
    %c0_5 = arith.constant 0 : index
    %c0_6 = arith.constant 0 : index
    %2 = vector.load %arg1[%c0_3, %c0_4, %c0_5, %c0_6] : memref<1x2x32x89xf32, #tpu.memory_space<vmem>>, vector<1x1x32x89xf32>
    %3 = vector.shape_cast %2 : vector<1x1x32x89xf32> to vector<32x89xf32>
    %cst = arith.constant dense<0.000000e+00> : vector<32x89xf32>
    %4 = tpu.matmul %0, %3, %cst {dimension_numbers = #tpu.dot_dimension_numbers<[1], [0], [0], [1], [0, 0, 1, 1], [], []>} : vector<32x32xf32>, vector<32x89xf32>, vector<32x89xf32> -> vector<32x89xf32>
    %5 = vector.broadcast %1 : vector<32x1xf32> to vector<32x89xf32>
    %6 = arith.addf %4, %5 : vector<32x89xf32>
    %cst_7 = arith.constant 0.000000e+00 : f32
    %7 = vector.broadcast %cst_7 : f32 to vector<32x89xf32>
    %8 = arith.maximumf %6, %7 : vector<32x89xf32>
    %c0_8 = arith.constant 0 : index
    %c1 = arith.constant 1 : index
    %c0_9 = arith.constant 0 : index
    %c0_10 = arith.constant 0 : index
    %9 = vector.load %arg1[%c0_8, %c1, %c0_9, %c0_10] : memref<1x2x32x89xf32, #tpu.memory_space<vmem>>, vector<1x1x32x89xf32>
    %10 = vector.shape_cast %9 : vector<1x1x32x89xf32> to vector<32x89xf32>
    %cst_11 = arith.constant dense<0.000000e+00> : vector<32x89xf32>
    %11 = tpu.matmul %0, %10, %cst_11 {dimension_numbers = #tpu.dot_dimension_numbers<[1], [0], [0], [1], [0, 0, 1, 1], [], []>} : vector<32x32xf32>, vector<32x89xf32>, vector<32x89xf32> -> vector<32x89xf32>
    %12 = vector.broadcast %1 : vector<32x1xf32> to vector<32x89xf32>
    %13 = arith.addf %11, %12 : vector<32x89xf32>
    %cst_12 = arith.constant 0.000000e+00 : f32
    %14 = vector.broadcast %cst_12 : f32 to vector<32x89xf32>
    %15 = arith.maximumf %13, %14 : vector<32x89xf32>
    %cst_13 = arith.constant 0.000000e+00 : f32
    %16 = vector.broadcast %cst_13 : f32 to vector<4x8xf32>
    %17 = vector.extract_strided_slice %8 {offsets = [0, 0], sizes = [2, 89], strides = [1, 1]} : vector<32x89xf32> to vector<2x89xf32>
    %18 = vector.extract_strided_slice %15 {offsets = [0, 0], sizes = [2, 89], strides = [1, 1]} : vector<32x89xf32> to vector<2x89xf32>
    %19 = tpu.concatenate %17, %18 in 0 : vector<2x89xf32>, vector<2x89xf32> -> vector<4x89xf32>
    %c0_14 = arith.constant 0 : index
    %c0_15 = arith.constant 0 : index
    %c0_16 = arith.constant 0 : index
    %20 = vector.load %arg4[%c0_14, %c0_15, %c0_16] : memref<16x89x8xf32, #tpu.memory_space<vmem>>, vector<1x89x8xf32>
    %21 = vector.shape_cast %20 : vector<1x89x8xf32> to vector<89x8xf32>
    %cst_17 = arith.constant dense<0.000000e+00> : vector<4x8xf32>
    %22 = tpu.matmul %19, %21, %cst_17 {dimension_numbers = #tpu.dot_dimension_numbers<[1], [0], [0], [1], [0, 0, 1, 1], [], []>} : vector<4x89xf32>, vector<89x8xf32>, vector<4x8xf32> -> vector<4x8xf32>
    %23 = arith.addf %16, %22 : vector<4x8xf32>
    %24 = vector.extract_strided_slice %8 {offsets = [2, 0], sizes = [2, 89], strides = [1, 1]} : vector<32x89xf32> to vector<2x89xf32>
    %25 = vector.extract_strided_slice %15 {offsets = [2, 0], sizes = [2, 89], strides = [1, 1]} : vector<32x89xf32> to vector<2x89xf32>
    %26 = tpu.concatenate %24, %25 in 0 : vector<2x89xf32>, vector<2x89xf32> -> vector<4x89xf32>
    %c1_18 = arith.constant 1 : index
    %c0_19 = arith.constant 0 : index
    %c0_20 = arith.constant 0 : index
    %27 = vector.load %arg4[%c1_18, %c0_19, %c0_20] : memref<16x89x8xf32, #tpu.memory_space<vmem>>, vector<1x89x8xf32>
    %28 = vector.shape_cast %27 : vector<1x89x8xf32> to vector<89x8xf32>
    %cst_21 = arith.constant dense<0.000000e+00> : vector<4x8xf32>
    %29 = tpu.matmul %26, %28, %cst_21 {dimension_numbers = #tpu.dot_dimension_numbers<[1], [0], [0], [1], [0, 0, 1, 1], [], []>} : vector<4x89xf32>, vector<89x8xf32>, vector<4x8xf32> -> vector<4x8xf32>
    %30 = arith.addf %23, %29 : vector<4x8xf32>
    %31 = vector.extract_strided_slice %8 {offsets = [4, 0], sizes = [2, 89], strides = [1, 1]} : vector<32x89xf32> to vector<2x89xf32>
    %32 = vector.extract_strided_slice %15 {offsets = [4, 0], sizes = [2, 89], strides = [1, 1]} : vector<32x89xf32> to vector<2x89xf32>
    %33 = tpu.concatenate %31, %32 in 0 : vector<2x89xf32>, vector<2x89xf32> -> vector<4x89xf32>
    %c2 = arith.constant 2 : index
    %c0_22 = arith.constant 0 : index
    %c0_23 = arith.constant 0 : index
    %34 = vector.load %arg4[%c2, %c0_22, %c0_23] : memref<16x89x8xf32, #tpu.memory_space<vmem>>, vector<1x89x8xf32>
    %35 = vector.shape_cast %34 : vector<1x89x8xf32> to vector<89x8xf32>
    %cst_24 = arith.constant dense<0.000000e+00> : vector<4x8xf32>
    %36 = tpu.matmul %33, %35, %cst_24 {dimension_numbers = #tpu.dot_dimension_numbers<[1], [0], [0], [1], [0, 0, 1, 1], [], []>} : vector<4x89xf32>, vector<89x8xf32>, vector<4x8xf32> -> vector<4x8xf32>
    %37 = arith.addf %30, %36 : vector<4x8xf32>
    %38 = vector.extract_strided_slice %8 {offsets = [6, 0], sizes = [2, 89], strides = [1, 1]} : vector<32x89xf32> to vector<2x89xf32>
    %39 = vector.extract_strided_slice %15 {offsets = [6, 0], sizes = [2, 89], strides = [1, 1]} : vector<32x89xf32> to vector<2x89xf32>
    %40 = tpu.concatenate %38, %39 in 0 : vector<2x89xf32>, vector<2x89xf32> -> vector<4x89xf32>
    %c3 = arith.constant 3 : index
    %c0_25 = arith.constant 0 : index
    %c0_26 = arith.constant 0 : index
    %41 = vector.load %arg4[%c3, %c0_25, %c0_26] : memref<16x89x8xf32, #tpu.memory_space<vmem>>, vector<1x89x8xf32>
    %42 = vector.shape_cast %41 : vector<1x89x8xf32> to vector<89x8xf32>
    %cst_27 = arith.constant dense<0.000000e+00> : vector<4x8xf32>
    %43 = tpu.matmul %40, %42, %cst_27 {dimension_numbers = #tpu.dot_dimension_numbers<[1], [0], [0], [1], [0, 0, 1, 1], [], []>} : vector<4x89xf32>, vector<89x8xf32>, vector<4x8xf32> -> vector<4x8xf32>
    %44 = arith.addf %37, %43 : vector<4x8xf32>
    %45 = vector.extract_strided_slice %8 {offsets = [8, 0], sizes = [2, 89], strides = [1, 1]} : vector<32x89xf32> to vector<2x89xf32>
    %46 = vector.extract_strided_slice %15 {offsets = [8, 0], sizes = [2, 89], strides = [1, 1]} : vector<32x89xf32> to vector<2x89xf32>
    %47 = tpu.concatenate %45, %46 in 0 : vector<2x89xf32>, vector<2x89xf32> -> vector<4x89xf32>
    %c4 = arith.constant 4 : index
    %c0_28 = arith.constant 0 : index
    %c0_29 = arith.constant 0 : index
    %48 = vector.load %arg4[%c4, %c0_28, %c0_29] : memref<16x89x8xf32, #tpu.memory_space<vmem>>, vector<1x89x8xf32>
    %49 = vector.shape_cast %48 : vector<1x89x8xf32> to vector<89x8xf32>
    %cst_30 = arith.constant dense<0.000000e+00> : vector<4x8xf32>
    %50 = tpu.matmul %47, %49, %cst_30 {dimension_numbers = #tpu.dot_dimension_numbers<[1], [0], [0], [1], [0, 0, 1, 1], [], []>} : vector<4x89xf32>, vector<89x8xf32>, vector<4x8xf32> -> vector<4x8xf32>
    %51 = arith.addf %44, %50 : vector<4x8xf32>
    %52 = vector.extract_strided_slice %8 {offsets = [10, 0], sizes = [2, 89], strides = [1, 1]} : vector<32x89xf32> to vector<2x89xf32>
    %53 = vector.extract_strided_slice %15 {offsets = [10, 0], sizes = [2, 89], strides = [1, 1]} : vector<32x89xf32> to vector<2x89xf32>
    %54 = tpu.concatenate %52, %53 in 0 : vector<2x89xf32>, vector<2x89xf32> -> vector<4x89xf32>
    %c5 = arith.constant 5 : index
    %c0_31 = arith.constant 0 : index
    %c0_32 = arith.constant 0 : index
    %55 = vector.load %arg4[%c5, %c0_31, %c0_32] : memref<16x89x8xf32, #tpu.memory_space<vmem>>, vector<1x89x8xf32>
    %56 = vector.shape_cast %55 : vector<1x89x8xf32> to vector<89x8xf32>
    %cst_33 = arith.constant dense<0.000000e+00> : vector<4x8xf32>
    %57 = tpu.matmul %54, %56, %cst_33 {dimension_numbers = #tpu.dot_dimension_numbers<[1], [0], [0], [1], [0, 0, 1, 1], [], []>} : vector<4x89xf32>, vector<89x8xf32>, vector<4x8xf32> -> vector<4x8xf32>
    %58 = arith.addf %51, %57 : vector<4x8xf32>
    %59 = vector.extract_strided_slice %8 {offsets = [12, 0], sizes = [2, 89], strides = [1, 1]} : vector<32x89xf32> to vector<2x89xf32>
    %60 = vector.extract_strided_slice %15 {offsets = [12, 0], sizes = [2, 89], strides = [1, 1]} : vector<32x89xf32> to vector<2x89xf32>
    %61 = tpu.concatenate %59, %60 in 0 : vector<2x89xf32>, vector<2x89xf32> -> vector<4x89xf32>
    %c6 = arith.constant 6 : index
    %c0_34 = arith.constant 0 : index
    %c0_35 = arith.constant 0 : index
    %62 = vector.load %arg4[%c6, %c0_34, %c0_35] : memref<16x89x8xf32, #tpu.memory_space<vmem>>, vector<1x89x8xf32>
    %63 = vector.shape_cast %62 : vector<1x89x8xf32> to vector<89x8xf32>
    %cst_36 = arith.constant dense<0.000000e+00> : vector<4x8xf32>
    %64 = tpu.matmul %61, %63, %cst_36 {dimension_numbers = #tpu.dot_dimension_numbers<[1], [0], [0], [1], [0, 0, 1, 1], [], []>} : vector<4x89xf32>, vector<89x8xf32>, vector<4x8xf32> -> vector<4x8xf32>
    %65 = arith.addf %58, %64 : vector<4x8xf32>
    %66 = vector.extract_strided_slice %8 {offsets = [14, 0], sizes = [2, 89], strides = [1, 1]} : vector<32x89xf32> to vector<2x89xf32>
    %67 = vector.extract_strided_slice %15 {offsets = [14, 0], sizes = [2, 89], strides = [1, 1]} : vector<32x89xf32> to vector<2x89xf32>
    %68 = tpu.concatenate %66, %67 in 0 : vector<2x89xf32>, vector<2x89xf32> -> vector<4x89xf32>
    %c7 = arith.constant 7 : index
    %c0_37 = arith.constant 0 : index
    %c0_38 = arith.constant 0 : index
    %69 = vector.load %arg4[%c7, %c0_37, %c0_38] : memref<16x89x8xf32, #tpu.memory_space<vmem>>, vector<1x89x8xf32>
    %70 = vector.shape_cast %69 : vector<1x89x8xf32> to vector<89x8xf32>
    %cst_39 = arith.constant dense<0.000000e+00> : vector<4x8xf32>
    %71 = tpu.matmul %68, %70, %cst_39 {dimension_numbers = #tpu.dot_dimension_numbers<[1], [0], [0], [1], [0, 0, 1, 1], [], []>} : vector<4x89xf32>, vector<89x8xf32>, vector<4x8xf32> -> vector<4x8xf32>
    %72 = arith.addf %65, %71 : vector<4x8xf32>
    %73 = vector.extract_strided_slice %8 {offsets = [16, 0], sizes = [2, 89], strides = [1, 1]} : vector<32x89xf32> to vector<2x89xf32>
    %74 = vector.extract_strided_slice %15 {offsets = [16, 0], sizes = [2, 89], strides = [1, 1]} : vector<32x89xf32> to vector<2x89xf32>
    %75 = tpu.concatenate %73, %74 in 0 : vector<2x89xf32>, vector<2x89xf32> -> vector<4x89xf32>
    %c8 = arith.constant 8 : index
    %c0_40 = arith.constant 0 : index
    %c0_41 = arith.constant 0 : index
    %76 = vector.load %arg4[%c8, %c0_40, %c0_41] : memref<16x89x8xf32, #tpu.memory_space<vmem>>, vector<1x89x8xf32>
    %77 = vector.shape_cast %76 : vector<1x89x8xf32> to vector<89x8xf32>
    %cst_42 = arith.constant dense<0.000000e+00> : vector<4x8xf32>
    %78 = tpu.matmul %75, %77, %cst_42 {dimension_numbers = #tpu.dot_dimension_numbers<[1], [0], [0], [1], [0, 0, 1, 1], [], []>} : vector<4x89xf32>, vector<89x8xf32>, vector<4x8xf32> -> vector<4x8xf32>
    %79 = arith.addf %72, %78 : vector<4x8xf32>
    %80 = vector.extract_strided_slice %8 {offsets = [18, 0], sizes = [2, 89], strides = [1, 1]} : vector<32x89xf32> to vector<2x89xf32>
    %81 = vector.extract_strided_slice %15 {offsets = [18, 0], sizes = [2, 89], strides = [1, 1]} : vector<32x89xf32> to vector<2x89xf32>
    %82 = tpu.concatenate %80, %81 in 0 : vector<2x89xf32>, vector<2x89xf32> -> vector<4x89xf32>
    %c9 = arith.constant 9 : index
    %c0_43 = arith.constant 0 : index
    %c0_44 = arith.constant 0 : index
    %83 = vector.load %arg4[%c9, %c0_43, %c0_44] : memref<16x89x8xf32, #tpu.memory_space<vmem>>, vector<1x89x8xf32>
    %84 = vector.shape_cast %83 : vector<1x89x8xf32> to vector<89x8xf32>
    %cst_45 = arith.constant dense<0.000000e+00> : vector<4x8xf32>
    %85 = tpu.matmul %82, %84, %cst_45 {dimension_numbers = #tpu.dot_dimension_numbers<[1], [0], [0], [1], [0, 0, 1, 1], [], []>} : vector<4x89xf32>, vector<89x8xf32>, vector<4x8xf32> -> vector<4x8xf32>
    %86 = arith.addf %79, %85 : vector<4x8xf32>
    %87 = vector.extract_strided_slice %8 {offsets = [20, 0], sizes = [2, 89], strides = [1, 1]} : vector<32x89xf32> to vector<2x89xf32>
    %88 = vector.extract_strided_slice %15 {offsets = [20, 0], sizes = [2, 89], strides = [1, 1]} : vector<32x89xf32> to vector<2x89xf32>
    %89 = tpu.concatenate %87, %88 in 0 : vector<2x89xf32>, vector<2x89xf32> -> vector<4x89xf32>
    %c10 = arith.constant 10 : index
    %c0_46 = arith.constant 0 : index
    %c0_47 = arith.constant 0 : index
    %90 = vector.load %arg4[%c10, %c0_46, %c0_47] : memref<16x89x8xf32, #tpu.memory_space<vmem>>, vector<1x89x8xf32>
    %91 = vector.shape_cast %90 : vector<1x89x8xf32> to vector<89x8xf32>
    %cst_48 = arith.constant dense<0.000000e+00> : vector<4x8xf32>
    %92 = tpu.matmul %89, %91, %cst_48 {dimension_numbers = #tpu.dot_dimension_numbers<[1], [0], [0], [1], [0, 0, 1, 1], [], []>} : vector<4x89xf32>, vector<89x8xf32>, vector<4x8xf32> -> vector<4x8xf32>
    %93 = arith.addf %86, %92 : vector<4x8xf32>
    %94 = vector.extract_strided_slice %8 {offsets = [22, 0], sizes = [2, 89], strides = [1, 1]} : vector<32x89xf32> to vector<2x89xf32>
    %95 = vector.extract_strided_slice %15 {offsets = [22, 0], sizes = [2, 89], strides = [1, 1]} : vector<32x89xf32> to vector<2x89xf32>
    %96 = tpu.concatenate %94, %95 in 0 : vector<2x89xf32>, vector<2x89xf32> -> vector<4x89xf32>
    %c11 = arith.constant 11 : index
    %c0_49 = arith.constant 0 : index
    %c0_50 = arith.constant 0 : index
    %97 = vector.load %arg4[%c11, %c0_49, %c0_50] : memref<16x89x8xf32, #tpu.memory_space<vmem>>, vector<1x89x8xf32>
    %98 = vector.shape_cast %97 : vector<1x89x8xf32> to vector<89x8xf32>
    %cst_51 = arith.constant dense<0.000000e+00> : vector<4x8xf32>
    %99 = tpu.matmul %96, %98, %cst_51 {dimension_numbers = #tpu.dot_dimension_numbers<[1], [0], [0], [1], [0, 0, 1, 1], [], []>} : vector<4x89xf32>, vector<89x8xf32>, vector<4x8xf32> -> vector<4x8xf32>
    %100 = arith.addf %93, %99 : vector<4x8xf32>
    %101 = vector.extract_strided_slice %8 {offsets = [24, 0], sizes = [2, 89], strides = [1, 1]} : vector<32x89xf32> to vector<2x89xf32>
    %102 = vector.extract_strided_slice %15 {offsets = [24, 0], sizes = [2, 89], strides = [1, 1]} : vector<32x89xf32> to vector<2x89xf32>
    %103 = tpu.concatenate %101, %102 in 0 : vector<2x89xf32>, vector<2x89xf32> -> vector<4x89xf32>
    %c12 = arith.constant 12 : index
    %c0_52 = arith.constant 0 : index
    %c0_53 = arith.constant 0 : index
    %104 = vector.load %arg4[%c12, %c0_52, %c0_53] : memref<16x89x8xf32, #tpu.memory_space<vmem>>, vector<1x89x8xf32>
    %105 = vector.shape_cast %104 : vector<1x89x8xf32> to vector<89x8xf32>
    %cst_54 = arith.constant dense<0.000000e+00> : vector<4x8xf32>
    %106 = tpu.matmul %103, %105, %cst_54 {dimension_numbers = #tpu.dot_dimension_numbers<[1], [0], [0], [1], [0, 0, 1, 1], [], []>} : vector<4x89xf32>, vector<89x8xf32>, vector<4x8xf32> -> vector<4x8xf32>
    %107 = arith.addf %100, %106 : vector<4x8xf32>
    %108 = vector.extract_strided_slice %8 {offsets = [26, 0], sizes = [2, 89], strides = [1, 1]} : vector<32x89xf32> to vector<2x89xf32>
    %109 = vector.extract_strided_slice %15 {offsets = [26, 0], sizes = [2, 89], strides = [1, 1]} : vector<32x89xf32> to vector<2x89xf32>
    %110 = tpu.concatenate %108, %109 in 0 : vector<2x89xf32>, vector<2x89xf32> -> vector<4x89xf32>
    %c13 = arith.constant 13 : index
    %c0_55 = arith.constant 0 : index
    %c0_56 = arith.constant 0 : index
    %111 = vector.load %arg4[%c13, %c0_55, %c0_56] : memref<16x89x8xf32, #tpu.memory_space<vmem>>, vector<1x89x8xf32>
    %112 = vector.shape_cast %111 : vector<1x89x8xf32> to vector<89x8xf32>
    %cst_57 = arith.constant dense<0.000000e+00> : vector<4x8xf32>
    %113 = tpu.matmul %110, %112, %cst_57 {dimension_numbers = #tpu.dot_dimension_numbers<[1], [0], [0], [1], [0, 0, 1, 1], [], []>} : vector<4x89xf32>, vector<89x8xf32>, vector<4x8xf32> -> vector<4x8xf32>
    %114 = arith.addf %107, %113 : vector<4x8xf32>
    %115 = vector.extract_strided_slice %8 {offsets = [28, 0], sizes = [2, 89], strides = [1, 1]} : vector<32x89xf32> to vector<2x89xf32>
    %116 = vector.extract_strided_slice %15 {offsets = [28, 0], sizes = [2, 89], strides = [1, 1]} : vector<32x89xf32> to vector<2x89xf32>
    %117 = tpu.concatenate %115, %116 in 0 : vector<2x89xf32>, vector<2x89xf32> -> vector<4x89xf32>
    %c14 = arith.constant 14 : index
    %c0_58 = arith.constant 0 : index
    %c0_59 = arith.constant 0 : index
    %118 = vector.load %arg4[%c14, %c0_58, %c0_59] : memref<16x89x8xf32, #tpu.memory_space<vmem>>, vector<1x89x8xf32>
    %119 = vector.shape_cast %118 : vector<1x89x8xf32> to vector<89x8xf32>
    %cst_60 = arith.constant dense<0.000000e+00> : vector<4x8xf32>
    %120 = tpu.matmul %117, %119, %cst_60 {dimension_numbers = #tpu.dot_dimension_numbers<[1], [0], [0], [1], [0, 0, 1, 1], [], []>} : vector<4x89xf32>, vector<89x8xf32>, vector<4x8xf32> -> vector<4x8xf32>
    %121 = arith.addf %114, %120 : vector<4x8xf32>
    %122 = vector.extract_strided_slice %8 {offsets = [30, 0], sizes = [2, 89], strides = [1, 1]} : vector<32x89xf32> to vector<2x89xf32>
    %123 = vector.extract_strided_slice %15 {offsets = [30, 0], sizes = [2, 89], strides = [1, 1]} : vector<32x89xf32> to vector<2x89xf32>
    %124 = tpu.concatenate %122, %123 in 0 : vector<2x89xf32>, vector<2x89xf32> -> vector<4x89xf32>
    %c15 = arith.constant 15 : index
    %c0_61 = arith.constant 0 : index
    %c0_62 = arith.constant 0 : index
    %125 = vector.load %arg4[%c15, %c0_61, %c0_62] : memref<16x89x8xf32, #tpu.memory_space<vmem>>, vector<1x89x8xf32>
    %126 = vector.shape_cast %125 : vector<1x89x8xf32> to vector<89x8xf32>
    %cst_63 = arith.constant dense<0.000000e+00> : vector<4x8xf32>
    %127 = tpu.matmul %124, %126, %cst_63 {dimension_numbers = #tpu.dot_dimension_numbers<[1], [0], [0], [1], [0, 0, 1, 1], [], []>} : vector<4x89xf32>, vector<89x8xf32>, vector<4x8xf32> -> vector<4x8xf32>
    %128 = arith.addf %121, %127 : vector<4x8xf32>
    %c0_64 = arith.constant 0 : index
    %c0_65 = arith.constant 0 : index
    %129 = vector.load %arg5[%c0_64, %c0_65] : memref<1x8xf32, #tpu.memory_space<vmem>>, vector<1x8xf32>
    %130 = vector.broadcast %129 : vector<1x8xf32> to vector<4x8xf32>
    %131 = arith.addf %128, %130 : vector<4x8xf32>
    %cst_66 = arith.constant 0.000000e+00 : f32
    %132 = vector.broadcast %cst_66 : f32 to vector<4x8xf32>
    %133 = arith.maximumf %131, %132 : vector<4x8xf32>
    %c0_67 = arith.constant 0 : index
    %c0_68 = arith.constant 0 : index
    %134 = vector.load %arg6[%c0_67, %c0_68] : memref<8x4xf32, #tpu.memory_space<vmem>>, vector<8x4xf32>
    %cst_69 = arith.constant dense<0.000000e+00> : vector<4x4xf32>
    %135 = tpu.matmul %133, %134, %cst_69 {dimension_numbers = #tpu.dot_dimension_numbers<[1], [0], [0], [1], [0, 0, 1, 1], [], []>} : vector<4x8xf32>, vector<8x4xf32>, vector<4x4xf32> -> vector<4x4xf32>
    %c0_70 = arith.constant 0 : index
    %c0_71 = arith.constant 0 : index
    %136 = vector.load %arg7[%c0_70, %c0_71] : memref<1x4xf32, #tpu.memory_space<vmem>>, vector<1x4xf32>
    %137 = vector.broadcast %136 : vector<1x4xf32> to vector<4x4xf32>
    %138 = arith.addf %135, %137 : vector<4x4xf32>
    %cst_72 = arith.constant 0.000000e+00 : f32
    %139 = vector.broadcast %cst_72 : f32 to vector<4x4xf32>
    %140 = arith.maximumf %138, %139 : vector<4x4xf32>
    %c0_73 = arith.constant 0 : index
    %c0_74 = arith.constant 0 : index
    %c0_75 = arith.constant 0 : index
    %141 = vector.load %arg8[%c0_73, %c0_74, %c0_75] : memref<1x4x4xf32, #tpu.memory_space<vmem>>, vector<1x4x4xf32>
    %142 = vector.shape_cast %141 : vector<1x4x4xf32> to vector<4x4xf32>
    %143 = vector.shape_cast %140 : vector<4x4xf32> to vector<1x4x4xf32>
    tpu.vector_store %arg8[%c0_73, %c0_74, %c0_75], %143 {strides = array<i32>} : memref<1x4x4xf32, #tpu.memory_space<vmem>>, vector<1x4x4xf32>,
    return
  }
  func.func @transform_0(%arg0: i32) -> (i32, i32, i32, i32) {
    %c0_i32 = arith.constant 0 : i32
    %c0_i32_0 = arith.constant 0 : i32
    %c0_i32_1 = arith.constant 0 : i32
    %c0_i32_2 = arith.constant 0 : i32
    return %arg0, %c0_i32, %c0_i32_0, %c0_i32_1 : i32, i32, i32, i32
  }
  func.func @transform_1(%arg0: i32) -> (i32, i32) {
    %c0_i32 = arith.constant 0 : i32
    %c0_i32_0 = arith.constant 0 : i32
    %c0_i32_1 = arith.constant 0 : i32
    return %c0_i32, %c0_i32_0 : i32, i32
  }
  func.func @transform_2(%arg0: i32) -> (i32, i32) {
    %c0_i32 = arith.constant 0 : i32
    %c0_i32_0 = arith.constant 0 : i32
    %c0_i32_1 = arith.constant 0 : i32
    return %c0_i32, %c0_i32_0 : i32, i32
  }
  func.func @transform_3(%arg0: i32) -> (i32, i32, i32) {
    %c0_i32 = arith.constant 0 : i32
    %c0_i32_0 = arith.constant 0 : i32
    %c0_i32_1 = arith.constant 0 : i32
    %c0_i32_2 = arith.constant 0 : i32
    return %c0_i32, %c0_i32_0, %c0_i32_1 : i32, i32, i32
  }
  func.func @transform_4(%arg0: i32) -> (i32, i32) {
    %c0_i32 = arith.constant 0 : i32
    %c0_i32_0 = arith.constant 0 : i32
    %c0_i32_1 = arith.constant 0 : i32
    return %c0_i32, %c0_i32_0 : i32, i32
  }
  func.func @transform_5(%arg0: i32) -> (i32, i32) {
    %c0_i32 = arith.constant 0 : i32
    %c0_i32_0 = arith.constant 0 : i32
    %c0_i32_1 = arith.constant 0 : i32
    return %c0_i32, %c0_i32_0 : i32, i32
  }
  func.func @transform_6(%arg0: i32) -> (i32, i32) {
    %c0_i32 = arith.constant 0 : i32
    %c0_i32_0 = arith.constant 0 : i32
    %c0_i32_1 = arith.constant 0 : i32
    return %c0_i32, %c0_i32_0 : i32, i32
  }
  func.func @transform_7(%arg0: i32) -> (i32, i32, i32) {
    %c0_i32 = arith.constant 0 : i32
    %c0_i32_0 = arith.constant 0 : i32
    %c0_i32_1 = arith.constant 0 : i32
    return %arg0, %c0_i32, %c0_i32_0 : i32, i32, i32
  }
}

</mosaic_0001>

<bundles_post_ra>
// kernel: stnet_forward.1
= control target key start
LH: loop header
LB: loop body
LE: loop exit
PB: predicated region body
PF: predicated region fallthrough
CT: control target
= control target key end

     0   :  { %s1498_s24 = smov 0   ;;  %s2200_s0 = inlined_call_operand.vmem [shape: f32[2,2,32,89], index: 0, kind: input, shape index: {}]   ;;  %s2201_s1 = inlined_call_operand.vmem [shape: f32[32,32], index: 1, kind: input, shape index: {}]   ;;  %s2202_s2 = inlined_call_operand.vmem [shape: f32[32,1], index: 2, kind: input, shape index: {}]   ;;  %s2203_s3 = inlined_call_operand.vmem [shape: f32[16,89,8], index: 3, kind: input, shape index: {}]   ;;  %s2204_s4 = inlined_call_operand.vmem [shape: f32[1,8], index: 4, kind: input, shape index: {}]   ;;  %s2205_s5 = inlined_call_operand.vmem [shape: f32[8,4], index: 5, kind: input, shape index: {}]   ;;  %s2206_s6 = inlined_call_operand.vmem [shape: f32[1,4], index: 6, kind: input, shape index: {}]   ;;  %s2207_s7 = inlined_call_operand.vmem [shape: f32[2,4,4], index: 7, kind: output, shape index: {}]  }
   0x1 LB: > { %s1196_s25 = sadd.s32 4294967295, %s1455_s24   ;;  %p1200_p0 = scmp.ge.s32.totalorder %s1455_s24, 1  ;;  %s1455_s24 = sphi %s1498_s24, %s17_s24  }
   0x2   : > { %p237_p1 = scmp.lt.s32.totalorder %s1455_s24, 3 }
   0x4   : > { %p238_p2 = pnand %p1200_p0, %p237_p1 }
   0x5   : > { %p268_p3 = scmp.lt.s32.totalorder (!%p238_p2), %s1196_s25, 1 }
   0x6   : > { %241 = sbr.rel (%p238_p2) target bundleno = 491 (0x1eb), region = 48 }
   0xb   : > { %v281_v0 = vld [vmem:[%s2202_s2] sm:$0xff]  ;;  %v1457_v1 = vmov 0   ;;  %s2209_s25 = smov (!%p268_p3, %s1196_s25), 1  ;;  %v283_v2 = vld [vmem:[%s2202_s2 + $0x10] sm:$0xff]  ;;  %v282_v7 = vld [vmem:[%s2202_s2 + $0x8] sm:$0xff]  ;;  %vm309_vm0 = vcmask 261120  }
   0xc   : > { %1445 = vset.pattern.permute.xlu0 %v1457_v1  ;;  %1446 = vset.pattern.permute.xlu1 %v1457_v1  ;;  %s1431_s30 = sshll.u32 %s2209_s25, 6  ;;  %v284_v10 = vld [vmem:[%s2202_s2 + $0x18] sm:$0xff]  ;;  %v277_v13 = vld [vmem:[%s2201_s1] sm:$0xff]  ;;  %vm431_vm1 = vcmask 1040384   ;;  %v1226_v19 = vld [vmem:[%s2203_s3 + $0xb0] sm:$0xff]  ;;  %vm396_vm2 = vcmask 1041408  }
   0xd   : > { %291 = vperm.xlu0 %1445, %v281_v0   ;;  %301 = vperm.xlu1 %1446, %v283_v2   ;;  %s272_s10 = scalar_lea.vmem %s2200_s0, %s1431_s30  ;;  %v1227_v14 = vld [vmem:[%s2203_s3 + $0xb8] sm:$0x1]  ;;  %v1242_v20 = vld [vmem:[%s2203_s3 + $0x110] sm:$0xff]  ;;  %v1225_v23 = vld [vmem:[%s2203_s3 + $0xa8] sm:$0xff]  ;;  %vm427_vm3 = vcmask 728064   ;;  %vm1116_vm4 = vcmask 64512  }
   0xe   : > { %v288_v3 = vld [vmem:[%s272_s10 + $0x18] sm:$0xff]  ;;  %v287_v5 = vld [vmem:[%s272_s10 + $0x10] sm:$0xff]  ;;  %v286_v8 = vld [vmem:[%s272_s10 + $0x8] sm:$0xff]  ;;  %1228 = vmatpush.msk.msra.mxu2 %vm431_vm1, %v1227_v14  ;;  %s1203_s14 = sshll.u32 %s2209_s25, 2  ;;  %vm1141_vm5 = vcmask 27648  }
   0xf   : > { %v1211_v4 = vld [vmem:[%s272_s10 + $0x38] sm:$0xff]  ;;  %334 = vmatpush.msra.mxu0 %v288_v3  ;;  %v1210_v6 = vld [vmem:[%s272_s10 + $0x30] sm:$0xff]  ;;  %v1209_v9 = vld [vmem:[%s272_s10 + $0x28] sm:$0xff]  ;;  %1432 = vmatpush.msra.mxu3 %v288_v3  ;;  %s276_s17 = scalar_lea.vmem %s2207_s7, %s1203_s14 }
  0x10   : > { %372 = vmatpush.msra.mxu1 %v1211_v4  ;;  %v285_v11 = vld [vmem:[%s272_s10] sm:$0xff]  ;;  %v1533_v15 = vld [vmem:[%s2201_s1 + $0x18] sm:$0xff]  ;;  %v408_v21 = vld [vmem:[%s2203_s3 + $0x50] sm:$0xff]  ;;  %440 = vmatpush.msra.mxu2 %v1226_v19 }
  0x11   : > { %335 = vmatpush.msra.mxu0 %v287_v5  ;;  %v1208_v12 = vld [vmem:[%s272_s10 + $0x20] sm:$0xff]  ;;  %1433 = vmatpush.msra.mxu3 %v287_v5  ;;  %v1243_v16 = vld [vmem:[%s2203_s3 + $0x118] sm:$0x1]  ;;  %v1256_v22 = vld [vmem:[%s2203_s3 + $0x170] sm:$0xff] }
  0x12   : > { %373 = vmatpush.msra.mxu1 %v1210_v6  ;;  %v409_v17 = vld [vmem:[%s2203_s3 + $0x58] sm:$0x1]  ;;  %v1241_v24 = vld [vmem:[%s2203_s3 + $0x108] sm:$0xff]  ;;  %441 = vmatpush.msra.mxu2 %v1225_v23  ;;  %v1224_v28 = vld [vmem:[%s2203_s3 + $0xa0] sm:$0xff] }
  0x13   : > { %336 = vmatpush.msra.mxu0 %v286_v8  ;;  %1434 = vmatpush.msra.mxu3 %v286_v8  ;;  %v1257_v18 = vld [vmem:[%s2203_s3 + $0x178] sm:$0x1]  ;;  %v407_v25 = vld [vmem:[%s2203_s3 + $0x48] sm:$0xff]  ;;  %v406_v29 = vld [vmem:[%s2203_s3 + $0x40] sm:$0xff] }
  0x14   : > { %374 = vmatpush.msra.mxu1 %v1209_v9  ;;  %v1255_v26 = vld [vmem:[%s2203_s3 + $0x168] sm:$0xff]  ;;  %v1240_v30 = vld [vmem:[%s2203_s3 + $0x100] sm:$0xff]  ;;  %v1223_v32 = vld [vmem:[%s2203_s3 + $0x98] sm:$0xff]  ;;  %442 = vmatpush.msra.mxu2 %v1224_v28 }
  0x15   : > { %296 = vperm.xlu0 %1445, %v282_v7   ;;  %306 = vperm.xlu1 %1446, %v284_v10   ;;  %v278_v27 = vld [vmem:[%s2201_s1 + $0x8] sm:$0xff]  ;;  %v1254_v31 = vld [vmem:[%s2203_s3 + $0x160] sm:$0xff]  ;;  %v405_v33 = vld [vmem:[%s2203_s3 + $0x38] sm:$0xff] }
  0x16   : > { %337 = vmatpush.msra.mxu0 %v285_v11  ;;  %375 = vmatpush.msra.mxu1 %v1208_v12  ;;  %v1239_v34 = vld [vmem:[%s2203_s3 + $0xf8] sm:$0xff]  ;;  %v1222_v36 = vld [vmem:[%s2203_s3 + $0x90] sm:$0xff]  ;;  %v1221_v40 = vld [vmem:[%s2203_s3 + $0x88] sm:$0xff] }
  0x17   : > { %1204 = vmatmul.msk.f32.vlgmr.msra.gmra.mxu0 %vm309_vm0, %v277_v13  ;;  %1212 = vmatmul.msk.f32.vlgmr.msra.gmra.mxu1 %vm309_vm0, %v277_v13  ;;  %v1253_v35 = vld [vmem:[%s2203_s3 + $0x158] sm:$0xff]  ;;  %v404_v37 = vld [vmem:[%s2203_s3 + $0x30] sm:$0xff]  ;;  %v403_v41 = vld [vmem:[%s2203_s3 + $0x28] sm:$0xff] }
  0x18   : > { %1435 = vmatpush.msra.mxu3 %v285_v11  ;;  %1244 = vmatpush.msk.msrb.mxu0 %vm431_vm1, %v1243_v16  ;;  %v1238_v38 = vld [vmem:[%s2203_s3 + $0xf0] sm:$0xff]  ;;  %v1237_v43 = vld [vmem:[%s2203_s3 + $0xe8] sm:$0xff]  ;;  %v1220_v45 = vld [vmem:[%s2203_s3 + $0x80] sm:$0xff] }
  0x19   : > { %1207 = vmatmul.msk.f32.vlgmr.msra.gmra.mxu3 %vm309_vm0, %v1533_v15  ;;  %1258 = vmatpush.msk.msrb.mxu1 %vm431_vm1, %v1257_v18  ;;  %v1252_v39 = vld [vmem:[%s2203_s3 + $0x150] sm:$0xff]  ;;  %v1251_v44 = vld [vmem:[%s2203_s3 + $0x148] sm:$0xff]  ;;  %v402_v46 = vld [vmem:[%s2203_s3 + $0x20] sm:$0xff] }
  0x1a   : > { %1230 = vmatpush.msk.msrb.mxu3 %vm431_vm1, %v409_v17  ;;  %510 = vmatpush.msrb.mxu0 %v1242_v20  ;;  %v279_v42 = vld [vmem:[%s2201_s1 + $0x10] sm:$0xff]  ;;  %v1236_v47 = vld [vmem:[%s2203_s3 + $0xe0] sm:$0xff]  ;;  %v1219_v49 = vld [vmem:[%s2203_s3 + $0x78] sm:$0xff] }
  0x1b   : > { %555 = vmatpush.msrb.mxu1 %v1256_v22  ;;  %443 = vmatpush.msra.mxu2 %v1223_v32  ;;  %v1250_v48 = vld [vmem:[%s2203_s3 + $0x140] sm:$0xff]  ;;  %v401_v50 = vld [vmem:[%s2203_s3 + $0x18] sm:$0xff]  ;;  %v1218_v53 = vld [vmem:[%s2203_s3 + $0x70] sm:$0xff] }
  0x1c   : > { %466 = vmatpush.msrb.mxu3 %v408_v21  ;;  %511 = vmatpush.msrb.mxu0 %v1241_v24  ;;  %v1235_v51 = vld [vmem:[%s2203_s3 + $0xd8] sm:$0xff]  ;;  %v400_v54 = vld [vmem:[%s2203_s3 + $0x10] sm:$0xff]  ;;  %v1217_v57 = vld [vmem:[%s2203_s3 + $0x68] sm:$0xff] }
  0x1d   : > { %556 = vmatpush.msrb.mxu1 %v1255_v26  ;;  %444 = vmatpush.msra.mxu2 %v1222_v36  ;;  %v1249_v52 = vld [vmem:[%s2203_s3 + $0x138] sm:$0xff]  ;;  %v1234_v55 = vld [vmem:[%s2203_s3 + $0xd0] sm:$0xff]  ;;  %v399_v58 = vld [vmem:[%s2203_s3 + $0x8] sm:$0xff] }
  0x1e   : > { %467 = vmatpush.msrb.mxu3 %v407_v25  ;;  %512 = vmatpush.msrb.mxu0 %v1240_v30  ;;  %v1248_v56 = vld [vmem:[%s2203_s3 + $0x130] sm:$0xff]  ;;  %v1233_v59 = vld [vmem:[%s2203_s3 + $0xc8] sm:$0xff]  ;;  %v1216_v61 = vld [vmem:[%s2203_s3 + $0x60] sm:$0xff] }
  0x1f   : > { %1205 = vmatmul.msk.f32.gmra.mxu0 %vm309_vm0, %v278_v27  ;;  %1213 = vmatmul.msk.f32.gmra.mxu1 %vm309_vm0, %v278_v27  ;;  %v1247_v60 = vld [vmem:[%s2203_s3 + $0x128] sm:$0xff]  ;;  %v398_v62 = vld [vmem:[%s2203_s3] sm:$0xff]  ;;  %v1271_v1 = vld [vmem:[%s2203_s3 + $0x1d8] sm:$0x1] }
  0x20   : > { %468 = vmatpush.msrb.mxu3 %v406_v29  ;;  %557 = vmatpush.msrb.mxu1 %v1254_v31  ;;  %v1232_v63 = vld [vmem:[%s2203_s3 + $0xc0] sm:$0xff]  ;;  %v1285_v2 = vld [vmem:[%s2203_s3 + $0x238] sm:$0x1]  ;;  %v1270_v5 = vld [vmem:[%s2203_s3 + $0x1d0] sm:$0xff] }
  0x21   : > { %513 = vmatpush.msrb.mxu0 %v1239_v34  ;;  %445 = vmatpush.msra.mxu2 %v1221_v40  ;;  %v1246_v0 = vld [vmem:[%s2203_s3 + $0x120] sm:$0xff]  ;;  %v1299_v3 = vld [vmem:[%s2203_s3 + $0x298] sm:$0x1]  ;;  %v1284_v6 = vld [vmem:[%s2203_s3 + $0x230] sm:$0xff] }
  0x22   : > { %469 = vmatpush.msrb.mxu3 %v405_v33  ;;  %558 = vmatpush.msrb.mxu1 %v1253_v35  ;;  %v1313_v4 = vld [vmem:[%s2203_s3 + $0x2f8] sm:$0x1]  ;;  %v1298_v7 = vld [vmem:[%s2203_s3 + $0x290] sm:$0xff]  ;;  %v1269_v9 = vld [vmem:[%s2203_s3 + $0x1c8] sm:$0xff] }
  0x23   : > { %514 = vmatpush.msrb.mxu0 %v1238_v38  ;;  %446 = vmatpush.msra.mxu2 %v1220_v45  ;;  %v1312_v8 = vld [vmem:[%s2203_s3 + $0x2f0] sm:$0xff]  ;;  %v1283_v10 = vld [vmem:[%s2203_s3 + $0x228] sm:$0xff]  ;;  %v1268_v13 = vld [vmem:[%s2203_s3 + $0x1c0] sm:$0xff] }
  0x24   : > { %470 = vmatpush.msrb.mxu3 %v404_v37  ;;  %559 = vmatpush.msrb.mxu1 %v1252_v39  ;;  %v1297_v11 = vld [vmem:[%s2203_s3 + $0x288] sm:$0xff]  ;;  %v1282_v14 = vld [vmem:[%s2203_s3 + $0x220] sm:$0xff]  ;;  %v1267_v17 = vld [vmem:[%s2203_s3 + $0x1b8] sm:$0xff] }
  0x25   : > { %515 = vmatpush.msrb.mxu0 %v1237_v43  ;;  %447 = vmatpush.msra.mxu2 %v1219_v49  ;;  %v1311_v12 = vld [vmem:[%s2203_s3 + $0x2e8] sm:$0xff]  ;;  %v1310_v16 = vld [vmem:[%s2203_s3 + $0x2e0] sm:$0xff]  ;;  %v1281_v18 = vld [vmem:[%s2203_s3 + $0x218] sm:$0xff] }
  0x26   : > { %471 = vmatpush.msrb.mxu3 %v403_v41  ;;  %560 = vmatpush.msrb.mxu1 %v1251_v44  ;;  %v1295_v19 = vld [vmem:[%s2203_s3 + $0x278] sm:$0xff]  ;;  %v1266_v21 = vld [vmem:[%s2203_s3 + $0x1b0] sm:$0xff]  ;;  %v1265_v25 = vld [vmem:[%s2203_s3 + $0x1a8] sm:$0xff] }
  0x27   : > { %1214 = vmatmul.msk.f32.gmra.mxu1 %vm309_vm0, %v279_v42  ;;  %1206 = vmatmul.msk.f32.gmra.mxu0 %vm309_vm0, %v279_v42  ;;  %v1309_v20 = vld [vmem:[%s2203_s3 + $0x2d8] sm:$0xff]  ;;  %v1280_v22 = vld [vmem:[%s2203_s3 + $0x210] sm:$0xff]  ;;  %v1279_v26 = vld [vmem:[%s2203_s3 + $0x208] sm:$0xff] }
  0x28   : > { %472 = vmatpush.msrb.mxu3 %v402_v46  ;;  %516 = vmatpush.msrb.mxu0 %v1236_v47  ;;  %v1294_v23 = vld [vmem:[%s2203_s3 + $0x270] sm:$0xff]  ;;  %v1293_v27 = vld [vmem:[%s2203_s3 + $0x268] sm:$0xff]  ;;  %v1264_v29 = vld [vmem:[%s2203_s3 + $0x1a0] sm:$0xff] }
  0x29   : > { %561 = vmatpush.msrb.mxu1 %v1250_v48  ;;  %448 = vmatpush.msra.mxu2 %v1218_v53  ;;  %v1308_v24 = vld [vmem:[%s2203_s3 + $0x2d0] sm:$0xff]  ;;  %v1307_v28 = vld [vmem:[%s2203_s3 + $0x2c8] sm:$0xff]  ;;  %v1278_v30 = vld [vmem:[%s2203_s3 + $0x200] sm:$0xff] }
  0x2a   : > { %473 = vmatpush.msrb.mxu3 %v401_v50  ;;  %517 = vmatpush.msrb.mxu0 %v1235_v51  ;;  %v1292_v31 = vld [vmem:[%s2203_s3 + $0x260] sm:$0xff]  ;;  %v1263_v33 = vld [vmem:[%s2203_s3 + $0x198] sm:$0xff]  ;;  %v1262_v37 = vld [vmem:[%s2203_s3 + $0x190] sm:$0xff] }
  0x2b   : > { %562 = vmatpush.msrb.mxu1 %v1249_v52  ;;  %449 = vmatpush.msra.mxu2 %v1217_v57  ;;  %v1306_v32 = vld [vmem:[%s2203_s3 + $0x2c0] sm:$0xff]  ;;  %v1277_v34 = vld [vmem:[%s2203_s3 + $0x1f8] sm:$0xff]  ;;  %v1276_v38 = vld [vmem:[%s2203_s3 + $0x1f0] sm:$0xff] }
  0x2c   : > { %474 = vmatpush.msrb.mxu3 %v400_v54  ;;  %518 = vmatpush.msrb.mxu0 %v1234_v55  ;;  %v1291_v35 = vld [vmem:[%s2203_s3 + $0x258] sm:$0xff]  ;;  %v1290_v39 = vld [vmem:[%s2203_s3 + $0x250] sm:$0xff]  ;;  %v1261_v41 = vld [vmem:[%s2203_s3 + $0x188] sm:$0xff] }
  0x2d   : > { %563 = vmatpush.msrb.mxu1 %v1248_v56  ;;  %450 = vmatpush.msra.mxu2 %v1216_v61  ;;  %v1305_v36 = vld [vmem:[%s2203_s3 + $0x2b8] sm:$0xff]  ;;  %v1304_v40 = vld [vmem:[%s2203_s3 + $0x2b0] sm:$0xff]  ;;  %v1275_v42 = vld [vmem:[%s2203_s3 + $0x1e8] sm:$0xff] }
  0x2e   : > { %475 = vmatpush.msrb.mxu3 %v399_v58  ;;  %519 = vmatpush.msrb.mxu0 %v1233_v59  ;;  %v1289_v43 = vld [vmem:[%s2203_s3 + $0x248] sm:$0xff]  ;;  %v1260_v45 = vld [vmem:[%s2203_s3 + $0x180] sm:$0xff] }
  0x2f   : > { %1215 = vmatmul.msk.f32.gmra.mxu1 %vm309_vm0, %v1533_v15  ;;  %1272 = vmatpush.msk.msrb.mxu2 %vm431_vm1, %v1271_v1  ;;  %v1296_v15 = vld [vmem:[%s2203_s3 + $0x280] sm:$0xff]  ;;  %v1303_v44 = vld [vmem:[%s2203_s3 + $0x2a8] sm:$0xff] }
  0x30   : > { %564 = vmatpush.msrb.mxu1 %v1247_v60  ;;  %476 = vmatpush.msrb.mxu3 %v398_v62  ;;  %v1274_v46 = vld [vmem:[%s2203_s3 + $0x1e0] sm:$0xff] }
  0x31   : > { %520 = vmatpush.msrb.mxu0 %v1232_v63  ;;  %599 = vmatpush.msrb.mxu2 %v1270_v5  ;;  %v1288_v47 = vld [vmem:[%s2203_s3 + $0x240] sm:$0xff] }
  0x32   : > { %565 = vmatpush.msrb.mxu1 %v1246_v0  ;;  %1286 = vmatpush.msk.msra.mxu3 %vm431_vm1, %v1285_v2  ;;  %v1302_v48 = vld [vmem:[%s2203_s3 + $0x2a0] sm:$0xff]  ;;  %v1327_v2 = vld [vmem:[%s2203_s3 + $0x358] sm:$0x1] }
  0x33   : > { %1300 = vmatpush.msk.msra.mxu0 %vm431_vm1, %v1299_v3  ;;  %600 = vmatpush.msrb.mxu2 %v1269_v9  ;;  %v1341_v3 = vld [vmem:[%s2203_s3 + $0x3b8] sm:$0x1] }
  0x34   : > { %1314 = vmatpush.msk.msra.mxu1 %vm431_vm1, %v1313_v4  ;;  %643 = vmatpush.msra.mxu3 %v1284_v6 }
  0x35   : > { %688 = vmatpush.msra.mxu0 %v1298_v7  ;;  %601 = vmatpush.msrb.mxu2 %v1268_v13  ;;  %v1355_v7 = vld [vmem:[%s2203_s3 + $0x418] sm:$0x1]  ;;  %v1354_v13 = vld [vmem:[%s2203_s3 + $0x410] sm:$0xff] }
  0x36   : > { %733 = vmatpush.msra.mxu1 %v1312_v8  ;;  %644 = vmatpush.msra.mxu3 %v1283_v10  ;;  %v1369_v8 = vld [vmem:[%s2203_s3 + $0x478] sm:$0x1] }
  0x37   : > { %689 = vmatpush.msra.mxu0 %v1297_v11  ;;  %602 = vmatpush.msrb.mxu2 %v1267_v17  ;;  %v1326_v11 = vld [vmem:[%s2203_s3 + $0x350] sm:$0xff]  ;;  %v1325_v17 = vld [vmem:[%s2203_s3 + $0x348] sm:$0xff] }
  0x38   : > { %734 = vmatpush.msra.mxu1 %v1311_v12  ;;  %645 = vmatpush.msra.mxu3 %v1282_v14  ;;  %v1340_v12 = vld [vmem:[%s2203_s3 + $0x3b0] sm:$0xff] }
  0x39   : > { %690 = vmatpush.msra.mxu0 %v1296_v15  ;;  %603 = vmatpush.msrb.mxu2 %v1266_v21  ;;  %v1368_v14 = vld [vmem:[%s2203_s3 + $0x470] sm:$0xff] }
  0x3a   : > { %735 = vmatpush.msra.mxu1 %v1310_v16  ;;  %646 = vmatpush.msra.mxu3 %v1281_v18  ;;  %v1339_v18 = vld [vmem:[%s2203_s3 + $0x3a8] sm:$0xff] }
  0x3b   : > { %691 = vmatpush.msra.mxu0 %v1295_v19  ;;  %604 = vmatpush.msrb.mxu2 %v1265_v25  ;;  %v1353_v19 = vld [vmem:[%s2203_s3 + $0x408] sm:$0xff]  ;;  %v1324_v25 = vld [vmem:[%s2203_s3 + $0x340] sm:$0xff] }
  0x3c   : > { %736 = vmatpush.msra.mxu1 %v1309_v20  ;;  %647 = vmatpush.msra.mxu3 %v1280_v22  ;;  %v1367_v20 = vld [vmem:[%s2203_s3 + $0x468] sm:$0xff] }
  0x3d   : > { %692 = vmatpush.msra.mxu0 %v1294_v23  ;;  %605 = vmatpush.msrb.mxu2 %v1264_v29  ;;  %v1366_v29 = vld [vmem:[%s2203_s3 + $0x460] sm:$0xff] }
  0x3e   : > { %737 = vmatpush.msra.mxu1 %v1308_v24  ;;  %648 = vmatpush.msra.mxu3 %v1279_v26  ;;  %v1338_v26 = vld [vmem:[%s2203_s3 + $0x3a0] sm:$0xff] }
  0x3f   : > { %693 = vmatpush.msra.mxu0 %v1293_v27  ;;  %606 = vmatpush.msrb.mxu2 %v1263_v33 }
  0x40   : > { %738 = vmatpush.msra.mxu1 %v1307_v28  ;;  %649 = vmatpush.msra.mxu3 %v1278_v30  ;;  %v1352_v28 = vld [vmem:[%s2203_s3 + $0x400] sm:$0xff] }
  0x41   : > { %694 = vmatpush.msra.mxu0 %v1292_v31  ;;  %607 = vmatpush.msrb.mxu2 %v1262_v37  ;;  %v1351_v37 = vld [vmem:[%s2203_s3 + $0x3f8] sm:$0xff] }
  0x42   : > { %739 = vmatpush.msra.mxu1 %v1306_v32  ;;  %650 = vmatpush.msra.mxu3 %v1277_v34 }
  0x43   : > { %695 = vmatpush.msra.mxu0 %v1291_v35  ;;  %608 = vmatpush.msrb.mxu2 %v1261_v41  ;;  %v1323_v35 = vld [vmem:[%s2203_s3 + $0x338] sm:$0xff]  ;;  %v1322_v41 = vld [vmem:[%s2203_s3 + $0x330] sm:$0xff] }
  0x44   : > { %740 = vmatpush.msra.mxu1 %v1305_v36  ;;  %651 = vmatpush.msra.mxu3 %v1276_v38  ;;  %v1337_v36 = vld [vmem:[%s2203_s3 + $0x398] sm:$0xff] }
  0x45   : > { %696 = vmatpush.msra.mxu0 %v1290_v39  ;;  %609 = vmatpush.msrb.mxu2 %v1260_v45  ;;  %v1365_v38 = vld [vmem:[%s2203_s3 + $0x458] sm:$0xff] }
  0x46   : > { %741 = vmatpush.msra.mxu1 %v1304_v40  ;;  %652 = vmatpush.msra.mxu3 %v1275_v42  ;;  %v1336_v42 = vld [vmem:[%s2203_s3 + $0x390] sm:$0xff] }
  0x47   : > { %697 = vmatpush.msra.mxu0 %v1289_v43  ;;  %v1350_v43 = vld [vmem:[%s2203_s3 + $0x3f0] sm:$0xff] }
  0x48   : > { %742 = vmatpush.msra.mxu1 %v1303_v44  ;;  %653 = vmatpush.msra.mxu3 %v1274_v46  ;;  %v1364_v44 = vld [vmem:[%s2203_s3 + $0x450] sm:$0xff]  ;;  %v1321_v46 = vld [vmem:[%s2203_s3 + $0x328] sm:$0xff] }
  0x49   : > { %698 = vmatpush.msra.mxu0 %v1288_v47  ;;  %v1335_v47 = vld [vmem:[%s2203_s3 + $0x388] sm:$0xff] }
  0x4a   : > { %743 = vmatpush.msra.mxu1 %v1302_v48 }
  0x7f   : > { %v292_v49 = vpop.permute.xlu0 %291  ;;  %v302_v39 = vpop.permute.xlu1 %301 }
  0x87   : > { %v297_v62 = vpop.permute.xlu0 %296 }
  0x94   : > { %v339_v50 = vpop.f32.mrf.mxu0  ;;  %v377_v51 = vpop.f32.mrf.mxu1 }
  0x95   : > { %v340_v52 = vadd.f32 %v339_v50, %v292_v49  ;;  %v378_v53 = vadd.f32 %v377_v51, %v292_v49  ;;  %v1349_v49 = vld [vmem:[%s2203_s3 + $0x3e8] sm:$0xff]  ;;  %v1320_v51 = vld [vmem:[%s2203_s3 + $0x320] sm:$0xff] }
  0x96   : > { %v1363_v50 = vld [vmem:[%s2203_s3 + $0x448] sm:$0xff] }
  0x97   : > { %v351_v54 = vmax.f32 %v340_v52, 0.0  ;;  %v389_v55 = vmax.f32 %v378_v53, 0.0  ;;  %v1334_v52 = vld [vmem:[%s2203_s3 + $0x380] sm:$0xff] }
  0x99   : > { %v411_v56 = vrot.slane %v351_v54, 2  ;;  %v394_v57 = vrot.slane %v389_v55, 6  ;;  %v481_v58 = vrot.slane %v351_v54, 4  ;;  %v483_v59 = vrot.slane %v389_v55, 2 }
  0x9a   : > { %v526_v60 = vrot.slane %v351_v54, 6  ;;  %v528_v61 = vrot.slane %v389_v55, 4 }
  0x9b   : > { %v413_v63 = vsel %vm396_vm2, %v411_v56, %v389_v55  ;;  %v397_v0 = vsel %vm396_vm2, %v351_v54, %v394_v57  ;;  %v485_v1 = vsel %vm396_vm2, %v481_v58, %v483_v59  ;;  %v1348_v54 = vld [vmem:[%s2203_s3 + $0x3e0] sm:$0xff]  ;;  %v1319_v57 = vld [vmem:[%s2203_s3 + $0x318] sm:$0xff] }
  0x9c   : > { %v342_v4 = vpop.f32.mrf.mxu0  ;;  %v380_v5 = vpop.f32.mrf.mxu1  ;;  %1229 = vmatmul.msk.f32.vlgmr.msra.gmra.mxu2 %vm427_vm3, %v413_v63  ;;  %1231 = vmatmul.msk.f32.vlgmr.msrb.gmra.mxu3 %vm427_vm3, %v397_v0  ;;  %v530_v6 = vsel %vm396_vm2, %v526_v60, %v528_v61  ;;  %v1362_v55 = vld [vmem:[%s2203_s3 + $0x440] sm:$0xff]  ;;  %v1333_v58 = vld [vmem:[%s2203_s3 + $0x378] sm:$0xff]  ;;  %v1332_v63 = vld [vmem:[%s2203_s3 + $0x370] sm:$0xff] }
  0x9d   : > { %v343_v9 = vadd.f32 %v342_v4, %v297_v62  ;;  %v381_v10 = vadd.f32 %v380_v5, %v297_v62  ;;  %1245 = vmatmul.msk.f32.vlgmr.msrb.gmra.mxu0 %vm427_vm3, %v485_v1  ;;  %1259 = vmatmul.msk.f32.vlgmr.msrb.gmra.mxu1 %vm427_vm3, %v530_v6  ;;  %v1347_v59 = vld [vmem:[%s2203_s3 + $0x3d8] sm:$0xff]  ;;  %v1318_v62 = vld [vmem:[%s2203_s3 + $0x310] sm:$0xff]  ;;  %v1331_v4 = vld [vmem:[%s2203_s3 + $0x368] sm:$0xff] }
  0x9e   : > { %1328 = vmatpush.msk.msra.mxu2 %vm431_vm1, %v1327_v2  ;;  %1342 = vmatpush.msk.msrb.mxu3 %vm431_vm1, %v1341_v3  ;;  %v1361_v60 = vld [vmem:[%s2203_s3 + $0x438] sm:$0xff]  ;;  %v1346_v0 = vld [vmem:[%s2203_s3 + $0x3d0] sm:$0xff]  ;;  %v1317_v3 = vld [vmem:[%s2203_s3 + $0x308] sm:$0xff] }
  0x9f   : > { %v352_v15 = vmax.f32 %v343_v9, 0.0  ;;  %v390_v16 = vmax.f32 %v381_v10, 0.0  ;;  %1356 = vmatpush.msk.msrb.mxu0 %vm431_vm1, %v1355_v7  ;;  %1370 = vmatpush.msk.msrb.mxu1 %vm431_vm1, %v1369_v8  ;;  %v1360_v1 = vld [vmem:[%s2203_s3 + $0x430] sm:$0xff]  ;;  %v1345_v5 = vld [vmem:[%s2203_s3 + $0x3c8] sm:$0xff]  ;;  %v1316_v8 = vld [vmem:[%s2203_s3 + $0x300] sm:$0xff] }
  0xa0   : > { %777 = vmatpush.msra.mxu2 %v1326_v11  ;;  %821 = vmatpush.msrb.mxu3 %v1340_v12  ;;  %v1359_v6 = vld [vmem:[%s2203_s3 + $0x428] sm:$0xff]  ;;  %v1330_v9 = vld [vmem:[%s2203_s3 + $0x360] sm:$0xff] }
  0xa1   : > { %v616_v21 = vrot.slane %v352_v15, 2  ;;  %v659_v22 = vrot.slane %v352_v15, 4  ;;  %v704_v23 = vrot.slane %v352_v15, 6  ;;  %v661_v24 = vrot.slane %v390_v16, 2  ;;  %866 = vmatpush.msrb.mxu0 %v1354_v13  ;;  %911 = vmatpush.msrb.mxu1 %v1368_v14  ;;  %v1344_v10 = vld [vmem:[%s2203_s3 + $0x3c0] sm:$0xff] }
  0xa2   : > { %v706_v27 = vrot.slane %v390_v16, 4  ;;  %778 = vmatpush.msra.mxu2 %v1325_v17  ;;  %822 = vmatpush.msrb.mxu3 %v1339_v18  ;;  %v572_v30 = vrot.slane %v390_v16, 6  ;;  %v1358_v11 = vld [vmem:[%s2203_s3 + $0x420] sm:$0xff]  ;;  %v1397_v13 = vld [vmem:[%s2203_s3 + $0x538] sm:$0x1]  ;;  %v1382_v18 = vld [vmem:[%s2203_s3 + $0x4d0] sm:$0xff] }
  0xa3   : > { %867 = vmatpush.msrb.mxu0 %v1353_v19  ;;  %912 = vmatpush.msrb.mxu1 %v1367_v20  ;;  %v618_v31 = vsel %vm396_vm2, %v616_v21, %v390_v16  ;;  %v663_v33 = vsel %vm396_vm2, %v659_v22, %v661_v24  ;;  %v1383_v14 = vld [vmem:[%s2203_s3 + $0x4d8] sm:$0x1]  ;;  %v1396_v19 = vld [vmem:[%s2203_s3 + $0x530] sm:$0xff]  ;;  %v1381_v22 = vld [vmem:[%s2203_s3 + $0x4c8] sm:$0xff] }
  0xa4   : > { %779 = vmatpush.msra.mxu2 %v1324_v25  ;;  %823 = vmatpush.msrb.mxu3 %v1338_v26  ;;  %v574_v32 = vsel %vm396_vm2, %v352_v15, %v572_v30  ;;  %v708_v34 = vsel %vm396_vm2, %v704_v23, %v706_v27  ;;  %v383_v40 = vpop.f32.mrf.mxu1  ;;  %v345_v45 = vpop.f32.mrf.mxu0  ;;  %v1411_v15 = vld [vmem:[%s2203_s3 + $0x598] sm:$0x1]  ;;  %v1410_v20 = vld [vmem:[%s2203_s3 + $0x590] sm:$0xff]  ;;  %v1395_v23 = vld [vmem:[%s2203_s3 + $0x528] sm:$0xff] }
  0xa5   : > { %868 = vmatpush.msrb.mxu0 %v1352_v28  ;;  %913 = vmatpush.msrb.mxu1 %v1366_v29  ;;  %v384_v48 = vadd.f32 %v383_v40, %v302_v39  ;;  %v346_v53 = vadd.f32 %v345_v45, %v302_v39  ;;  %v1425_v16 = vld [vmem:[%s2203_s3 + $0x5f8] sm:$0x1]  ;;  %v1424_v21 = vld [vmem:[%s2203_s3 + $0x5f0] sm:$0xff]  ;;  %v1409_v24 = vld [vmem:[%s2203_s3 + $0x588] sm:$0xff]  ;;  %v307_v40 = vpop.permute.xlu1 %306 }
  0xa6   : > { %1273 = vmatmul.msk.f32.vlgmr.msrb.gmra.mxu2 %vm427_vm3, %v574_v32  ;;  %1287 = vmatmul.msk.f32.vlgmr.msra.gmra.mxu3 %vm427_vm3, %v618_v31  ;;  %v1423_v25 = vld [vmem:[%s2203_s3 + $0x5e8] sm:$0xff]  ;;  %v1380_v28 = vld [vmem:[%s2203_s3 + $0x4c0] sm:$0xff]  ;;  %v1379_v32 = vld [vmem:[%s2203_s3 + $0x4b8] sm:$0xff] }
  0xa7   : > { %1301 = vmatmul.msk.f32.vlgmr.msra.gmra.mxu0 %vm427_vm3, %v663_v33  ;;  %1315 = vmatmul.msk.f32.vlgmr.msra.gmra.mxu1 %vm427_vm3, %v708_v34  ;;  %v1960_v56 = vmax.f32 %v384_v48, 0.0  ;;  %v1974_v61 = vmax.f32 %v346_v53, 0.0  ;;  %v1394_v29 = vld [vmem:[%s2203_s3 + $0x520] sm:$0xff]  ;;  %v1393_v33 = vld [vmem:[%s2203_s3 + $0x518] sm:$0xff]  ;;  %v1378_v39 = vld [vmem:[%s2203_s3 + $0x4b0] sm:$0xff] }
  0xa8   : > { %780 = vmatpush.msra.mxu2 %v1323_v35  ;;  %824 = vmatpush.msrb.mxu3 %v1337_v36  ;;  %v1408_v30 = vld [vmem:[%s2203_s3 + $0x580] sm:$0xff]  ;;  %v1407_v36 = vld [vmem:[%s2203_s3 + $0x578] sm:$0xff]  ;;  %v1420_v45 = vld [vmem:[%s2203_s3 + $0x5d0] sm:$0xff] }
  0xa9   : > { %869 = vmatpush.msrb.mxu0 %v1351_v37  ;;  %914 = vmatpush.msrb.mxu1 %v1365_v38  ;;  %v750_v2 = vrot.slane %v1960_v56, 6  ;;  %v794_v7 = vrot.slane %v1974_v61, 2  ;;  %v839_v26 = vrot.slane %v1960_v56, 2  ;;  %v837_v27 = vrot.slane %v1974_v61, 4  ;;  %v1422_v31 = vld [vmem:[%s2203_s3 + $0x5e0] sm:$0xff]  ;;  %v1421_v37 = vld [vmem:[%s2203_s3 + $0x5d8] sm:$0xff] }
  0xaa   : > { %781 = vmatpush.msra.mxu2 %v1322_v41  ;;  %825 = vmatpush.msrb.mxu3 %v1336_v42  ;;  %v884_v34 = vrot.slane %v1960_v56, 4  ;;  %v882_v35 = vrot.slane %v1974_v61, 6  ;;  %v1392_v41 = vld [vmem:[%s2203_s3 + $0x510] sm:$0xff]  ;;  %v1391_v48 = vld [vmem:[%s2203_s3 + $0x508] sm:$0xff]  ;;  %v1376_v53 = vld [vmem:[%s2203_s3 + $0x4a0] sm:$0xff] }
  0xab   : > { %870 = vmatpush.msrb.mxu0 %v1350_v43  ;;  %915 = vmatpush.msrb.mxu1 %v1364_v44  ;;  %v752_v12 = vsel %vm396_vm2, %v1974_v61, %v750_v2  ;;  %v796_v17 = vsel %vm396_vm2, %v794_v7, %v1960_v56  ;;  %v841_v38 = vsel %vm396_vm2, %v837_v27, %v839_v26  ;;  %v1406_v42 = vld [vmem:[%s2203_s3 + $0x570] sm:$0xff]  ;;  %v348_v43 = vpop.f32.mrf.mxu3  ;;  %v1418_v56 = vld [vmem:[%s2203_s3 + $0x5c0] sm:$0xff] }
  0xac   : > { %782 = vmatpush.msra.mxu2 %v1321_v46  ;;  %826 = vmatpush.msrb.mxu3 %v1335_v47  ;;  %v386_v44 = vpop.f32.mrf.mxu1  ;;  %v1377_v46 = vld [vmem:[%s2203_s3 + $0x4a8] sm:$0xff]  ;;  %v886_v47 = vsel %vm396_vm2, %v882_v35, %v884_v34  ;;  %v1416_v2 = vld [vmem:[%s2203_s3 + $0x5b0] sm:$0xff] }
  0xad   : > { %871 = vmatpush.msrb.mxu0 %v1349_v49  ;;  %916 = vmatpush.msrb.mxu1 %v1363_v50  ;;  %v1405_v49 = vld [vmem:[%s2203_s3 + $0x568] sm:$0xff] }
  0xae   : > { %783 = vmatpush.msra.mxu2 %v1320_v51  ;;  %827 = vmatpush.msrb.mxu3 %v1334_v52  ;;  %v1419_v50 = vld [vmem:[%s2203_s3 + $0x5c8] sm:$0xff]  ;;  %v349_v51 = vadd.f32 %v348_v43, %v307_v40  ;;  %v387_v52 = vadd.f32 %v386_v44, %v307_v40 }
  0xaf   : > { %872 = vmatpush.msrb.mxu0 %v1348_v54  ;;  %917 = vmatpush.msrb.mxu1 %v1362_v55  ;;  %v1390_v54 = vld [vmem:[%s2203_s3 + $0x500] sm:$0xff] }
  0xb0   : > { %784 = vmatpush.msra.mxu2 %v1319_v57  ;;  %828 = vmatpush.msrb.mxu3 %v1333_v58  ;;  %v1404_v55 = vld [vmem:[%s2203_s3 + $0x560] sm:$0xff]  ;;  %v1375_v57 = vld [vmem:[%s2203_s3 + $0x498] sm:$0xff]  ;;  %v354_v61 = vmax.f32 %v349_v51, 0.0 }
  0xb1   : > { %873 = vmatpush.msrb.mxu0 %v1347_v59  ;;  %918 = vmatpush.msrb.mxu1 %v1361_v60  ;;  %v1389_v58 = vld [vmem:[%s2203_s3 + $0x4f8] sm:$0xff]  ;;  %v1447_v51 = vld [vmem:[%s2204_s4] ss:$0 sm:$0xff] }
  0xb2   : > { %785 = vmatpush.msra.mxu2 %v1318_v62  ;;  %829 = vmatpush.msrb.mxu3 %v1332_v63  ;;  %v1403_v59 = vld [vmem:[%s2203_s3 + $0x558] sm:$0xff]  ;;  %v392_v62 = vmax.f32 %v387_v52, 0.0  ;;  %v1374_v63 = vld [vmem:[%s2203_s3 + $0x490] sm:$0xff]  ;;  %v972_v7 = vrot.slane %v354_v61, 2 }
  0xb3   : > { %874 = vmatpush.msrb.mxu0 %v1346_v0  ;;  %919 = vmatpush.msrb.mxu1 %v1360_v1  ;;  %v1417_v60 = vld [vmem:[%s2203_s3 + $0x5b8] sm:$0xff]  ;;  %v1388_v0 = vld [vmem:[%s2203_s3 + $0x4f0] sm:$0xff] }
  0xb4   : > { %786 = vmatpush.msra.mxu2 %v1317_v3  ;;  %830 = vmatpush.msrb.mxu3 %v1331_v4  ;;  %v1402_v1 = vld [vmem:[%s2203_s3 + $0x550] sm:$0xff]  ;;  %v1373_v3 = vld [vmem:[%s2203_s3 + $0x488] sm:$0xff] }
  0xb5   : > { %875 = vmatpush.msrb.mxu0 %v1345_v5  ;;  %920 = vmatpush.msrb.mxu1 %v1359_v6  ;;  %v1387_v4 = vld [vmem:[%s2203_s3 + $0x4e8] sm:$0xff] }
  0xb6   : > { %787 = vmatpush.msra.mxu2 %v1316_v8  ;;  %831 = vmatpush.msrb.mxu3 %v1330_v9  ;;  %v1401_v5 = vld [vmem:[%s2203_s3 + $0x548] sm:$0xff]  ;;  %v928_v8 = vrot.slane %v392_v62, 6  ;;  %v1372_v9 = vld [vmem:[%s2203_s3 + $0x480] sm:$0xff] }
  0xb7   : > { %876 = vmatpush.msrb.mxu0 %v1344_v10  ;;  %921 = vmatpush.msrb.mxu1 %v1358_v11  ;;  %v1415_v6 = vld [vmem:[%s2203_s3 + $0x5a8] sm:$0xff]  ;;  %v1386_v10 = vld [vmem:[%s2203_s3 + $0x4e0] sm:$0xff]  ;;  %v1015_v11 = vrot.slane %v354_v61, 4 }
  0xb8   : > { %1329 = vmatmul.msk.f32.vlgmr.msra.gmra.mxu2 %vm427_vm3, %v752_v12  ;;  %1398 = vmatpush.msk.msra.mxu3 %vm431_vm1, %v1397_v13  ;;  %v1060_v12 = vrot.slane %v354_v61, 6  ;;  %v1017_v13 = vrot.slane %v392_v62, 2 }
  0xb9   : > { %1384 = vmatpush.msk.msrb.mxu2 %vm431_vm1, %v1383_v14  ;;  %1412 = vmatpush.msk.msra.mxu0 %vm431_vm1, %v1411_v15  ;;  %v1062_v14 = vrot.slane %v392_v62, 4  ;;  %v1400_v15 = vld [vmem:[%s2203_s3 + $0x540] sm:$0xff] }
  0xba   : > { %1426 = vmatpush.msk.msra.mxu1 %vm431_vm1, %v1425_v16  ;;  %1343 = vmatmul.msk.f32.vlgmr.msrb.gmra.mxu3 %vm427_vm3, %v796_v17  ;;  %v1414_v16 = vld [vmem:[%s2203_s3 + $0x5a0] sm:$0xff]  ;;  %v930_v17 = vsel %vm396_vm2, %v354_v61, %v928_v8 }
  0xbb   : > { %955 = vmatpush.msrb.mxu2 %v1382_v18  ;;  %999 = vmatpush.msra.mxu3 %v1396_v19  ;;  %v974_v18 = vsel %vm396_vm2, %v972_v7, %v392_v62  ;;  %v1019_v19 = vsel %vm396_vm2, %v1015_v11, %v1017_v13 }
  0xbc   : > { %1044 = vmatpush.msra.mxu0 %v1410_v20  ;;  %1089 = vmatpush.msra.mxu1 %v1424_v21  ;;  %v1064_v20 = vsel %vm396_vm2, %v1060_v12, %v1062_v14 }
  0xbd   : > { %956 = vmatpush.msrb.mxu2 %v1381_v22  ;;  %1000 = vmatpush.msra.mxu3 %v1395_v23 }
  0xbe   : > { %1045 = vmatpush.msra.mxu0 %v1409_v24  ;;  %1090 = vmatpush.msra.mxu1 %v1423_v25 }
  0xbf   : > { %957 = vmatpush.msrb.mxu2 %v1380_v28  ;;  %1001 = vmatpush.msra.mxu3 %v1394_v29 }
  0xc0   : > { %1046 = vmatpush.msra.mxu0 %v1408_v30  ;;  %1091 = vmatpush.msra.mxu1 %v1422_v31 }
  0xc1   : > { %958 = vmatpush.msrb.mxu2 %v1379_v32  ;;  %1002 = vmatpush.msra.mxu3 %v1393_v33  ;;  %v1111_v32 = vld [vmem:[%s2205_s5] sm:$0xff] }
  0xc2   : > { %1047 = vmatpush.msra.mxu0 %v1407_v36  ;;  %1092 = vmatpush.msra.mxu1 %v1421_v37 }
  0xc3   : > { %1357 = vmatmul.msk.f32.vlgmr.msrb.gmra.mxu0 %vm427_vm3, %v841_v38  ;;  %959 = vmatpush.msrb.mxu2 %v1378_v39 }
  0xc4   : > { %1003 = vmatpush.msra.mxu3 %v1392_v41  ;;  %1048 = vmatpush.msra.mxu0 %v1406_v42 }
  0xc5   : > { %1093 = vmatpush.msra.mxu1 %v1420_v45  ;;  %960 = vmatpush.msrb.mxu2 %v1377_v46 }
  0xc6   : > { %1371 = vmatmul.msk.f32.vlgmr.msrb.gmra.mxu1 %vm427_vm3, %v886_v47  ;;  %1004 = vmatpush.msra.mxu3 %v1391_v48 }
  0xc7   : > { %1049 = vmatpush.msra.mxu0 %v1405_v49  ;;  %1094 = vmatpush.msra.mxu1 %v1419_v50 }
  0xc8   : > { %961 = vmatpush.msrb.mxu2 %v1376_v53  ;;  %1005 = vmatpush.msra.mxu3 %v1390_v54 }
  0xc9   : > { %1050 = vmatpush.msra.mxu0 %v1404_v55  ;;  %1095 = vmatpush.msra.mxu1 %v1418_v56  ;;  %v1448_v56 = vld [vmem:[%s2206_s6] ss:$0 sm:$0xff] }
  0xca   : > { %962 = vmatpush.msrb.mxu2 %v1375_v57  ;;  %1006 = vmatpush.msra.mxu3 %v1389_v58 }
  0xcb   : > { %1051 = vmatpush.msra.mxu0 %v1403_v59  ;;  %1096 = vmatpush.msra.mxu1 %v1417_v60 }
  0xcc   : > { %963 = vmatpush.msrb.mxu2 %v1374_v63  ;;  %1007 = vmatpush.msra.mxu3 %v1388_v0 }
  0xcd   : > { %1052 = vmatpush.msra.mxu0 %v1402_v1  ;;  %1097 = vmatpush.msra.mxu1 %v1416_v2 }
  0xce   : > { %964 = vmatpush.msrb.mxu2 %v1373_v3  ;;  %1008 = vmatpush.msra.mxu3 %v1387_v4 }
  0xcf   : > { %1053 = vmatpush.msra.mxu0 %v1401_v5  ;;  %1098 = vmatpush.msra.mxu1 %v1415_v6 }
  0xd0   : > { %965 = vmatpush.msrb.mxu2 %v1372_v9  ;;  %1009 = vmatpush.msra.mxu3 %v1386_v10 }
  0xd1   : > { %1054 = vmatpush.msra.mxu0 %v1400_v15  ;;  %1099 = vmatpush.msra.mxu1 %v1414_v16 }
  0xd2   : > { %1385 = vmatmul.msk.f32.vlgmr.msrb.gmra.mxu2 %vm427_vm3, %v930_v17  ;;  %1399 = vmatmul.msk.f32.vlgmr.msra.gmra.mxu3 %vm427_vm3, %v974_v18 }
  0xd3   : > { %1413 = vmatmul.msk.f32.vlgmr.msra.gmra.mxu0 %vm427_vm3, %v1019_v19  ;;  %1427 = vmatmul.msk.f32.vlgmr.msra.gmra.mxu1 %vm427_vm3, %v1064_v20 }
  0xd4   : > { %1135 = vmatpush.msra.mxu2 %v1111_v32 }
 0x11a   : > { %v522_v24 = vpop.f32.mrf.mxu0  ;;  %v567_v26 = vpop.f32.mrf.mxu1 }
 0x11f   : > { %v452_v21 = vpop.f32.mrf.mxu2  ;;  %v478_v22 = vpop.f32.mrf.mxu3 }
 0x120   : > { %v479_v23 = vadd.f32 %v478_v22, %v452_v21 }
 0x122   : > { %v525_v25 = vadd.f32 %v522_v24, %v479_v23 }
 0x124   : > { %v570_v28 = vadd.f32 %v567_v26, %v525_v25  ;;  %v700_v33 = vpop.f32.mrf.mxu0  ;;  %v745_v35 = vpop.f32.mrf.mxu1 }
 0x129   : > { %v611_v27 = vpop.f32.mrf.mxu2  ;;  %v655_v30 = vpop.f32.mrf.mxu3 }
 0x12a   : > { %v614_v29 = vadd.f32 %v611_v27, %v570_v28 }
 0x12c   : > { %v658_v31 = vadd.f32 %v655_v30, %v614_v29 }
 0x12e   : > { %v703_v34 = vadd.f32 %v700_v33, %v658_v31 }
 0x130   : > { %v748_v37 = vadd.f32 %v745_v35, %v703_v34 }
 0x13b   : > { %v789_v36 = vpop.f32.mrf.mxu2 }
 0x13c   : > { %v792_v38 = vadd.f32 %v789_v36, %v748_v37 }
 0x13d   : > { %v833_v39 = vpop.f32.mrf.mxu3 }
 0x13e   : > { %v836_v40 = vadd.f32 %v833_v39, %v792_v38 }
 0x140   : > { %v878_v41 = vpop.f32.mrf.mxu0 }
 0x141   : > { %v881_v42 = vadd.f32 %v878_v41, %v836_v40 }
 0x143   : > { %v923_v43 = vpop.f32.mrf.mxu1 }
 0x144   : > { %v926_v44 = vadd.f32 %v923_v43, %v881_v42 }
 0x150   : > { %v1056_v49 = vpop.f32.mrf.mxu0  ;;  %v1101_v52 = vpop.f32.mrf.mxu1 }
 0x155   : > { %v967_v45 = vpop.f32.mrf.mxu2  ;;  %v1011_v47 = vpop.f32.mrf.mxu3 }
 0x156   : > { %v970_v46 = vadd.f32 %v967_v45, %v926_v44 }
 0x158   : > { %v1014_v48 = vadd.f32 %v1011_v47, %v970_v46 }
 0x15a   : > { %v1059_v50 = vadd.f32 %v1056_v49, %v1014_v48 }
 0x15c   : > { %v1104_v53 = vadd.f32 %v1101_v52, %v1059_v50 }
 0x15e   : > { %v1109_v54 = vadd.f32 %v1447_v51, %v1104_v53 }
 0x160   : > { %v1110_v55 = vmax.f32 %v1109_v54, 0.0 }
 0x162   : > { %1428 = vmatmul.msk.f32.vlgmr.msra.gmra.mxu2 %vm1116_vm4, %v1110_v55 }
 0x1e5   : > { %v1137_v57 = vpop.f32.mrf.mxu2 }
 0x1e6   : > { %v1138_v58 = vadd.f32 %v1448_v56, %v1137_v57 }
 0x1e8   : > { %v1140_v59 = vmax.f32 %v1138_v58, 0.0 }
 0x1ea   : > { %1142 = vst.msk [vmem:[%s276_s17] sm:$0xf] %vm1141_vm5, %v1140_v59 }
 0x1eb PF: > { %s17_s24 = sadd.s32 1, %s1455_s24  }
 0x1ec   : > { %p14_p4 = scmp.ge.s32.totalorder %s17_s24, 4  }
 0x1ee   :  { %16 = sbr.rel (!%p14_p4) target bundleno = 1 (0x1), region = 94 }

</bundles_post_ra>
